<compile_context>
chip_gen: v6e
topology: v6e:2x2x1
jax: 0.10.0
libtpu: 0.0.40
codegen_flags: <defaults>
</compile_context>

<pallas_src>
import functools

import jax
import jax.numpy as jnp
from jax import lax
from jax.experimental import pallas as pl
from jax.experimental.pallas import tpu as pltpu

EPS = 1e-8


def _round_up(n, m):
    return ((n + m - 1) // m) * m


# --------------------------- spec module: RMSNorm ----------------------------


def rmsnorm_kernel(x_ref, scale_ref, o_ref):
    # torch RMSNorm: scale * x / (x.norm(2, -1, keepdim) * D**-0.5 + eps)
    x = x_ref[...]
    norm = jnp.sqrt(jnp.sum(x * x, axis=-1, keepdims=True)) * (x.shape[-1] ** -0.5)
    o_ref[...] = scale_ref[...] * x * pl.reciprocal(norm + EPS, approx=True)


def rmsnorm(x, scale):
    lead = x.shape[:-1]
    D = x.shape[-1]
    xf = x.reshape(-1, D)
    out = pl.pallas_call(
        rmsnorm_kernel,
        out_shape=jax.ShapeDtypeStruct(xf.shape, jnp.float32),
        in_specs=[pl.BlockSpec(memory_space=pltpu.MemorySpace.VMEM),
                  pl.BlockSpec(memory_space=pltpu.MemorySpace.VMEM)],
        out_specs=pl.BlockSpec(memory_space=pltpu.MemorySpace.VMEM),
    )(xf, scale.reshape(1, D))
    return out.reshape(*lead, D)


# --------------------------- fused model forward -----------------------------


def fused_forward_kernel(*args, meta):
    """args = (len_ref, x_ref, *weight_refs, out_ref)  [scalar prefetch first]."""
    len_ref = args[0]
    x_ref = args[1]
    out_ref = args[-1]
    w_refs = args[2:-1]
    assert len(w_refs) == meta['n_weights'], (len(w_refs), meta['n_weights'])

    f32, bf16 = jnp.float32, jnp.bfloat16
    B, S = meta['B'], meta['S']
    BS = B * S

    # Causal mask clamped at current_seq_len (flex_attention block_mask semantics,
    # fully masked rows -> 0).  Built once, shared by every block.
    L = len_ref[0]
    qi = lax.broadcasted_iota(jnp.int32, (S, S), 0)
    ki = lax.broadcasted_iota(jnp.int32, (S, S), 1)
    mask = (qi >= ki) & (qi < L) & (ki < L)          # [S, S]
    maskf = mask.astype(f32)[None]                   # [1, S, S]
    neg = jnp.float32(-1e30)

    cursor = 0

    def next_w():
        nonlocal cursor
        w = w_refs[cursor][...]
        cursor += 1
        return w

    def rms_normalize(v):
        # scale factors are folded into the following weight matrix
        norm = jnp.sqrt(jnp.sum(v * v, axis=-1, keepdims=True)) * (v.shape[-1] ** -0.5)
        return v * pl.reciprocal(norm + EPS, approx=True)

    # ---- input projection (RMS_split scale folded into the weight) ----
    x = x_ref[...]
    h = jnp.dot(rms_normalize(x).astype(bf16), next_w(),
                preferred_element_type=f32)                       # [BS, D0]

    for blk in meta['blocks']:
        Hq, Hkv, hd = blk['Hq'], blk['Hkv'], blk['hd']
        rep = Hq // Hkv
        wq, wk, wv, wo = next_w(), next_w(), next_w(), next_w()
        wm, wg, wo2 = next_w(), next_w(), next_w()

        # ---- multi-head attention (GQA), head-vectorized ----
        xn = rms_normalize(h).astype(bf16)
        q = jnp.dot(xn, wq, preferred_element_type=f32)           # [BS, Hq*hd], pre-scaled
        k = jnp.dot(xn, wk, preferred_element_type=f32)           # [BS, Hkv*hd]
        v = jnp.dot(xn, wv, preferred_element_type=f32)
        q3 = q.reshape(B, S, Hq * hd)
        k3 = k.reshape(B, S, Hkv * hd)
        v3 = v.reshape(B, S, Hkv * hd)

        # Stack heads onto the batch axis -> [Hq*B, S, hd]; KV heads repeated per group.
        q_h = jnp.concatenate([q3[:, :, i * hd:(i + 1) * hd] for i in range(Hq)], axis=0)
        k_h = jnp.concatenate(
            [k3[:, :, (i // rep) * hd:(i // rep + 1) * hd] for i in range(Hq)], axis=0)
        v_h = jnp.concatenate(
            [v3[:, :, (i // rep) * hd:(i // rep + 1) * hd] for i in range(Hq)], axis=0)

        s = jnp.einsum('bqd,bkd->bqk', q_h.astype(bf16), k_h.astype(bf16),
                       preferred_element_type=f32)                # [Hq*B, S, S] (f32)
        s = jnp.where(mask[None], s, neg)
        m = jnp.max(s, axis=-1, keepdims=True)
        p = jnp.exp(s - m) * maskf
        denom = jnp.sum(p, axis=-1, keepdims=True)
        inv = jnp.where(denom > 0.0, pl.reciprocal(denom, approx=True), 0.0)
        attn = p * inv                                            # fully-masked rows -> 0
        o_h = jnp.einsum('bqk,bkd->bqd', attn.astype(bf16), v_h.astype(bf16),
                         preferred_element_type=f32)              # [Hq*B, S, hd]

        # Concatenate heads back to a lane-dense [BS, Hq*hd] and do ONE out-projection.
        o_cat = jnp.concatenate(
            [o_h[i * B:(i + 1) * B].reshape(BS, hd) for i in range(Hq)], axis=-1)
        h = h + jnp.dot(o_cat.astype(bf16), wo, preferred_element_type=f32)

        # ---- SwiGLU (hidden zero-padded to a multiple of 128 lanes) ----
        xn = rms_normalize(h).astype(bf16)
        main = jnp.dot(xn, wm, preferred_element_type=f32)
        gate = jnp.dot(xn, wg, preferred_element_type=f32)
        gated = main * jax.nn.sigmoid(gate)                       # f32 elementwise
        h = h + jnp.dot(gated.astype(bf16), wo2, preferred_element_type=f32)

    # ---- final RMS -> Linear (zero-padded to 128 output lanes) -> tanh ----
    xn = rms_normalize(h).astype(bf16)
    out_ref[...] = jnp.tanh(jnp.dot(xn, next_w(), preferred_element_type=f32))
    assert cursor == len(w_refs)


# ------------------------------ params / prep --------------------------------


def _linear_w(key, in_dim, out_dim):
    # torch nn.Linear default init (weight shape (out, in)); stored transposed (in, out)
    bound = 1.0 / (in_dim ** 0.5)
    w = jax.random.uniform(key, (out_dim, in_dim), jnp.float32,
                           minval=-bound, maxval=bound)
    return jnp.transpose(w)


def init_model(key, input_dim, output_dim, hidden_dims):
    head_dim = hidden_dims[-2] // 4 if len(hidden_dims) >= 2 else 64
    gqa_heads = 2
    keys = iter(jax.random.split(key, 8 * len(hidden_dims) + 8))

    def scales(d):
        return (jnp.ones((1, d), jnp.float32),
                jnp.full((1, d), 0.1, jnp.float32))

    ns, ss = scales(input_dim)
    params = {
        'in_proj': {'ns': ns, 'ss': ss,
                    'w': _linear_w(next(keys), input_dim, hidden_dims[0])},
        'blocks': [],
    }
    for d in hidden_dims:
        num_q_heads = d // head_dim
        ns, ss = scales(d)
        mha = {
            'ns': ns, 'ss': ss,
            'wq': _linear_w(next(keys), d, num_q_heads * head_dim),
            'wk': _linear_w(next(keys), d, gqa_heads * head_dim),
            'wv': _linear_w(next(keys), d, gqa_heads * head_dim),
            'wo': _linear_w(next(keys), num_q_heads * head_dim, d),
            'num_q_heads': num_q_heads, 'num_kv_heads': gqa_heads,
            'head_dim': head_dim,
        }
        hdim = int(d * (8 / 3))                       # SwiGLU hidden (170 for d=64)
        wi = _linear_w(next(keys), d, 2 * hdim)       # torch chunk: [:H]=main, [H:]=gate
        ns2, ss2 = scales(d)
        swi = {'ns': ns2, 'ss': ss2,
               'wm': wi[:, :hdim], 'wg': wi[:, hdim:],
               'wo': _linear_w(next(keys), hdim, d)}
        params['blocks'].append((mha, swi))

    ns, ss = scales(hidden_dims[-1])
    params['final'] = {'ns': ns, 'ss': ss,
                       'w': _linear_w(next(keys), hidden_dims[-1], output_dim)}
    return params


def prepare_params(params, B, S):
    """Fold RMS scales / attention scale into weights, pad to lane-dense widths, cast
    weights to bf16 (f32 accumulation happens in-kernel)."""
    bf16 = jnp.bfloat16

    def fold(ns, ss, w):                              # diag(ns*ss) @ W
        return w * (ns * ss).reshape(-1, 1)

    flat = []
    p = params['in_proj']
    flat.append(fold(p['ns'], p['ss'], p['w']).astype(bf16))

    blocks_meta = []
    for mha_p, swi_p in params['blocks']:
        Hq, Hkv, hd = mha_p['num_q_heads'], mha_p['num_kv_heads'], mha_p['head_dim']
        flat.append((fold(mha_p['ns'], mha_p['ss'], mha_p['wq']) * (hd ** -0.5)).astype(bf16))
        flat.append(fold(mha_p['ns'], mha_p['ss'], mha_p['wk']).astype(bf16))
        flat.append(fold(mha_p['ns'], mha_p['ss'], mha_p['wv']).astype(bf16))
        flat.append(mha_p['wo'].astype(bf16))

        hdim = swi_p['wm'].shape[1]
        hpad = _round_up(hdim, 128)                   # 170 -> 256 lane-dense hidden
        wm = fold(swi_p['ns'], swi_p['ss'], swi_p['wm'])
        wg = fold(swi_p['ns'], swi_p['ss'], swi_p['wg'])
        flat.append(jnp.pad(wm, ((0, 0), (0, hpad - hdim))).astype(bf16))
        flat.append(jnp.pad(wg, ((0, 0), (0, hpad - hdim))).astype(bf16))
        flat.append(jnp.pad(swi_p['wo'], ((0, hpad - hdim), (0, 0))).astype(bf16))
        blocks_meta.append(dict(Hq=Hq, Hkv=Hkv, hd=hd))

    fp = params['final']
    out_dim = fp['w'].shape[1]
    out_pad = _round_up(out_dim, 128)                 # 4 -> 128 lane-dense final store
    flat.append(jnp.pad(fold(fp['ns'], fp['ss'], fp['w']),
                        ((0, 0), (0, out_pad - out_dim))).astype(bf16))

    meta = dict(B=B, S=S, blocks=blocks_meta, out_dim=out_dim, out_pad=out_pad,
                n_weights=len(flat))
    return flat, meta


def forward(flat, meta, x, current_seq_len):
    B, S, in_dim = x.shape
    assert (B, S) == (meta['B'], meta['S'])
    BS = B * S
    seq_len = jnp.array([current_seq_len], dtype=jnp.int32)
    n_inputs = 1 + len(flat)                          # x + flattened weights

    out = pl.pallas_call(
        functools.partial(fused_forward_kernel, meta=meta),
        out_shape=jax.ShapeDtypeStruct((BS, meta['out_pad']), jnp.float32),
        grid_spec=pltpu.PrefetchScalarGridSpec(
            num_scalar_prefetch=1,                    # current_seq_len -> SMEM
            grid=(1,),
            in_specs=[pl.BlockSpec(memory_space=pltpu.MemorySpace.VMEM)
                      for _ in range(n_inputs)],
            out_specs=pl.BlockSpec(memory_space=pltpu.MemorySpace.VMEM),
        ),
    )(seq_len, x.reshape(BS, in_dim), *flat)
    return out[:, :meta['out_dim']].reshape(B, S, meta['out_dim'])


# ----------------------------- pure-JAX reference ----------------------------


def ref_forward(params, x, current_seq_len):
    def rms_split(v, ns, ss):
        norm = jnp.sqrt(jnp.sum(v * v, axis=-1, keepdims=True)) * (v.shape[-1] ** -0.5)
        return (ns * v / (norm + EPS)) * ss

    B, S, _ = x.shape
    p = params['in_proj']
    h = rms_split(x, p['ns'], p['ss']) @ p['w']

    qi = jnp.arange(S)[:, None]
    ki = jnp.arange(S)[None, :]
    mask = (qi >= ki) & (qi < current_seq_len) & (ki < current_seq_len)

    for mha_p, swi_p in params['blocks']:
        Hq, Hkv, hd = mha_p['num_q_heads'], mha_p['num_kv_heads'], mha_p['head_dim']
        xn = rms_split(h, mha_p['ns'], mha_p['ss'])
        q = (xn @ mha_p['wq']).reshape(B, S, Hq, hd)
        k = (xn @ mha_p['wk']).reshape(B, S, Hkv, hd)
        v = (xn @ mha_p['wv']).reshape(B, S, Hkv, hd)
        rep = Hq // Hkv
        k = jnp.repeat(k, rep, axis=2)
        v = jnp.repeat(v, rep, axis=2)
        s = jnp.einsum('bqhd,bkhd->bhqk', q, k) * (hd ** -0.5)
        s = jnp.where(mask[None, None], s, -1e30)
        m = jnp.max(s, axis=-1, keepdims=True)
        pexp = jnp.exp(s - m) * mask[None, None].astype(jnp.float32)
        denom = jnp.sum(pexp, axis=-1, keepdims=True)
        attn = jnp.where(denom > 0.0, pexp / denom, 0.0)
        o = jnp.einsum('bhqk,bkhd->bqhd', attn, v).reshape(B, S, Hq * hd)
        h = h + o @ mha_p['wo']

        xn = rms_split(h, swi_p['ns'], swi_p['ss'])
        main = xn @ swi_p['wm']
        gate = xn @ swi_p['wg']
        h = (main * jax.nn.sigmoid(gate)) @ swi_p['wo'] + h

    fp = params['final']
    xn = rms_split(h, fp['ns'], fp['ss'])
    return jnp.tanh(xn @ fp['w'])


# ---------------------------------- main --------------------------------------


if __name__ == "__main__":
    key = jax.random.PRNGKey(0)
    B, S = 2, 8
    input_dim, output_dim = 16, 4
    hidden_dims = [64, 64]        # -> head_dim = 16, 4 q heads, 2 kv heads per MHA
    current_seq_len = 6           # exercises the valid-length clamp in the mask

    k_param, k_x, k_scale = jax.random.split(key, 3)
    params = init_model(k_param, input_dim, output_dim, hidden_dims)
    x = jax.random.normal(k_x, (B, S, input_dim), dtype=jnp.float32)

    # --- standalone RMSNorm (the spec module) ---
    scale = jax.random.uniform(k_scale, (hidden_dims[0],), jnp.float32, 0.5, 1.5)
    xh = jax.random.normal(k_scale, (B, S, hidden_dims[0]), dtype=jnp.float32)
    rn = jax.block_until_ready(rmsnorm(xh, scale))
    rn_ref = scale * xh / (jnp.linalg.norm(xh, axis=-1, keepdims=True)
                           * (hidden_dims[0] ** -0.5) + EPS)
    assert bool(jnp.allclose(rn, rn_ref, rtol=1e-2, atol=1e-3)), "RMSNorm mismatch"

    # --- fused model forward ---
    flat, meta = prepare_params(params, B, S)
    out = forward(flat, meta, x, current_seq_len)
    out = jax.block_until_ready(out)

    assert out.shape == (B, S, output_dim)
    assert bool(jnp.all(jnp.isfinite(out)))

    ref = ref_forward(params, x, current_seq_len)
    max_err = float(jnp.max(jnp.abs(out - ref)))
    # tolerance covers bf16 MXU operands + approximate (EUP) reciprocals vs f32 ref
    assert max_err < 2e-2, f"mismatch vs reference: {max_err}"

    # TODO(synk): torch.compile'd create_block_mask / flex_attention block-sparse
    # machinery has no Pallas equivalent; the mask semantics are reproduced in-kernel.
    print("KERNEL_OK")
</pallas_src>

<mosaic_0001>
module attributes {stable_mosaic.version = 11 : i64} {
  func.func @rmsnorm_kernel(%arg0: memref<16x64xf32, #tpu.memory_space<vmem>>, %arg1: memref<1x64xf32, #tpu.memory_space<vmem>>, %arg2: memref<16x64xf32, #tpu.memory_space<vmem>>) attributes {dimension_semantics = [], scalar_prefetch = 0 : i64, scratch_operands = 0 : i64, tpu.core_type = #tpu.core_type<tc>} {
    %c0 = arith.constant 0 : index
    %c0_0 = arith.constant 0 : index
    %0 = vector.load %arg0[%c0, %c0_0] : memref<16x64xf32, #tpu.memory_space<vmem>>, vector<16x64xf32>
    %1 = arith.mulf %0, %0 : vector<16x64xf32>
    %cst = arith.constant dense<0.000000e+00> : vector<16xf32>
    %2 = vector.multi_reduction <add>, %1, %cst [1] : vector<16x64xf32> to vector<16xf32>
    %3 = vector.shape_cast %2 : vector<16xf32> to vector<16x1xf32>
    %4 = math.sqrt %3 : vector<16x1xf32>
    %cst_1 = arith.constant 1.250000e-01 : f32
    %5 = vector.broadcast %cst_1 : f32 to vector<16x1xf32>
    %6 = arith.mulf %4, %5 : vector<16x1xf32>
    %c0_2 = arith.constant 0 : index
    %c0_3 = arith.constant 0 : index
    %7 = vector.load %arg1[%c0_2, %c0_3] : memref<1x64xf32, #tpu.memory_space<vmem>>, vector<1x64xf32>
    %8 = vector.broadcast %7 : vector<1x64xf32> to vector<16x64xf32>
    %9 = arith.mulf %8, %0 : vector<16x64xf32>
    %cst_4 = arith.constant 9.99999993E-9 : f32
    %10 = vector.broadcast %cst_4 : f32 to vector<16x1xf32>
    %11 = arith.addf %6, %10 : vector<16x1xf32>
    %12 = tpu.reciprocal %11 {approx = true} : vector<16x1xf32> -> vector<16x1xf32>
    %13 = vector.broadcast %12 : vector<16x1xf32> to vector<16x64xf32>
    %14 = arith.mulf %9, %13 : vector<16x64xf32>
    %c0_5 = arith.constant 0 : index
    %c0_6 = arith.constant 0 : index
    %15 = vector.load %arg2[%c0_5, %c0_6] : memref<16x64xf32, #tpu.memory_space<vmem>>, vector<16x64xf32>
    tpu.vector_store %arg2[%c0_5, %c0_6], %14 {strides = array<i32>} : memref<16x64xf32, #tpu.memory_space<vmem>>, vector<16x64xf32>,
    return
  }
}

</mosaic_0001>

<bundles_post_ra>
// kernel: tpu_custom_call.1
= control target key start
LH: loop header
LB: loop body
LE: loop exit
PB: predicated region body
PF: predicated region fallthrough
CT: control target
= control target key end

     0   :  { %7 = vsyncpa [#allocation3], 0  ;;  %s182_s0 = inlined_call_operand.hbm [shape: f32[16,64], index: 0, kind: input, shape index: {}]   ;;  %s183_s1 = inlined_call_operand.vmem [shape: f32[1,64], index: 1, kind: input, shape index: {}]   ;;  %s184_s2 = inlined_call_operand.hbm [shape: f32[16,64], index: 2, kind: output, shape index: {}]  }
   0x1   :  { %8 = vsyncpa [#allocation4], 0  ;;  %s144_s9 = smov [#allocation2]  }
   0x2   :  { %s14_s10 = sshll.u32 %s144_s9, 4  ;;  %s15_s10 = int_to_ptr.vmem [resolvable:$true] %s14_s10 }
   0x3   :  { %s108_s11 = scalar_lea.vmem %s15_s10, 256  ;;  %p113_p1 = scmp.lt.s32.totalorder %s15_s10, %s15_s10 }
   0x4   :  { %p109_p0 = scmp.ne.s32.totalorder %s15_s10, %s108_s11  ;;  %p114_p2 = scmp.lt.s32.totalorder %s108_s11, %s108_s11 }
   0x6   :  { %p115_p3 = por %p114_p2, %p113_p1 }
   0x8   :  { %p116_p4 = pnand %p115_p3, %p109_p0 }
   0xa   :  { %119 = shalt.err (!%p116_p4)
}
   0xb   :  { %s145_s12 = smov 128   ;;  %s146_s13 = smov 8  }
   0xc   :  { %20 = dma.hbm_to_vmem [thread:$0]  %s182_s0, 256, %s15_s10, [#allocation3], %s145_s12, %s145_s12, %s146_s13  }
   0xd   :  { %140 = dma.done.wait [#allocation3], 256  }
   0xe   :  { %141 = vsyncadd [#allocation3], 4294967040  ;;  %v26_v0 = vld [vmem:[#allocation2] sm:$0xff]  ;;  %vm30_vm0 = vcmask 523264   ;;  %v27_v1 = vld [vmem:[#allocation2 + $0x8] sm:$0xff]  ;;  %s147_s17 = smov [#allocation5]  }
   0xf   :  { %v28_v2 = vmul.f32 %v26_v0, %v26_v0  ;;  %v29_v3 = vmul.f32 %v27_v1, %v27_v1  ;;  %v87_v22 = vld [vmem:[%s183_s1] ss:$0 sm:$0xff]  ;;  %s75_s18 = sshll.u32 %s147_s17, 4  ;;  %s76_s18 = int_to_ptr.vmem [resolvable:$true] %s75_s18 }
  0x10   :  { %v60_v23 = vmul.f32 %v87_v22, %v26_v0  ;;  %v61_v25 = vmul.f32 %v87_v22, %v27_v1  ;;  %s120_s19 = scalar_lea.vmem %s76_s18, 256  ;;  %p125_p6 = scmp.lt.s32.totalorder %s76_s18, %s76_s18 }
  0x11   :  { %v31_v4 = vsel %vm30_vm0, %v28_v2, 0.0  ;;  %v34_v5 = vsel %vm30_vm0, %v29_v3, 0.0  ;;  %p121_p5 = scmp.ne.s32.totalorder %s76_s18, %s120_s19  ;;  %p126_p7 = scmp.lt.s32.totalorder %s120_s19, %s120_s19 }
  0x12   :  { %32 = vadd.xlane.f32.xlu0 %v31_v4 }
  0x13   :  { %p127_p8 = por %p126_p7, %p125_p6 }
  0x15   :  { %p128_p9 = pnand %p127_p8, %p121_p5 }
  0x16   :  { %35 = vadd.xlane.f32.xlu0 %v34_v5 }
  0x9b   :  { %v33_v6 = vpop.xlane.xlu0 %32 }
  0x9c   :  { %92 = vrsqrt.f32 %v33_v6  ;;  %vm39_vm1 = vcmp.eq.f32.partialorder %v33_v6, inf  ;;  %v42_v10 = vand.u32 2147483648, %v33_v6  ;;  %vm41_vm2 = vcmp.eq.f32.partialorder %v33_v6, 0.0 }
  0x9f   :  { %v36_v7 = vpop.xlane.xlu0 %35 }
  0xa0   :  { %94 = vrsqrt.f32 %v36_v7  ;;  %vm46_vm3 = vcmp.eq.f32.partialorder %v36_v7, inf  ;;  %v49_v16 = vand.u32 2147483648, %v36_v7  ;;  %vm48_vm4 = vcmp.eq.f32.partialorder %v36_v7, 0.0 }
  0xa9   :  { %v93_v8 = vpop.eup %92 }
  0xaa   :  { %v38_v9 = vmul.f32 %v93_v8, %v33_v6 }
  0xac   :  { %v40_v11 = vsel %vm39_vm1, %v33_v6, %v38_v9 }
  0xad   :  { %v95_v12 = vpop.eup %94  ;;  %v43_v13 = vsel %vm41_vm2, %v42_v10, %v40_v11 }
  0xae   :  { %v51_v14 = vmul.f32 0.125, %v43_v13  ;;  %v45_v15 = vmul.f32 %v95_v12, %v36_v7 }
  0xb0   :  { %v62_v17 = vadd.f32 1e-08, %v51_v14  ;;  %v47_v18 = vsel %vm46_vm3, %v36_v7, %v45_v15 }
  0xb1   :  { %v50_v19 = vsel %vm48_vm4, %v49_v16, %v47_v18 }
  0xb2   :  { %96 = vrcp.f32 %v62_v17  ;;  %v52_v20 = vmul.f32 0.125, %v50_v19 }
  0xb4   :  { %v63_v21 = vadd.f32 1e-08, %v52_v20 }
  0xb6   :  { %98 = vrcp.f32 %v63_v21 }
  0xbf   :  { %v97_v24 = vpop.eup %96 }
  0xc0   :  { %v66_v26 = vmul.f32 %v97_v24, %v60_v23 }
  0xc2   :  { %68 = vst.msk [vmem:[#allocation5] sm:$0xff] %vm30_vm0, %v66_v26 }
  0xc3   :  { %v99_v27 = vpop.eup %98 }
  0xc4   :  { %v67_v28 = vmul.f32 %v99_v27, %v61_v25 }
  0xc6   :  { %69 = vst.msk [vmem:[#allocation5 + $0x8] sm:$0xff] %vm30_vm0, %v67_v28 }
  0xc7   :  { %131 = shalt.err (!%p128_p9)
}
  0xc8   :  { %81 = dma.vmem_to_hbm [thread:$0]  %s76_s18, 256, %s184_s2, [#allocation4], %s145_s12, %s145_s12, %s146_s13  }
  0xc9   :  { %142 = dma.done.wait [#allocation4], 256  }
  0xca   :  { %143 = vsyncadd [#allocation4], 4294967040 }
  0xcb   :  { %85 = vsyncpa [#allocation3], 1 }
  0xcc   :  { %86 = vsyncpa [#allocation4], 1 }

</bundles_post_ra>
